<compile_context>
chip_gen: v7x
topology: tpu7x:2x2x1
jax: 0.10.0
libtpu: 0.0.40
codegen_flags: <defaults>
</compile_context>

<pallas_src>
import functools

import numpy as np
import jax
import jax.numpy as jnp
from jax.experimental import pallas as pl
from jax.experimental.pallas import tpu as pltpu


def _zero_padding_kernel(x_ref, o_ref, *, in_width):
    """x_ref: (bt, S*D)  ->  o_ref: (bt, S_out*D) with a zero tail per row."""
    # Copy the real sequence data (single full-block, lane-dense store).
    o_ref[:, :in_width] = x_ref[...]
    # Zero only the padded tail (disjoint from the copy above).
    o_ref[:, in_width:] = jnp.zeros(
        (o_ref.shape[0], o_ref.shape[1] - in_width), dtype=o_ref.dtype)


def zero_padding(x, *, len_seq, kernel_size, force_pallas=False):
    """Pallas equivalent of zero_padding(len_seq, kernel_size).forward(x).

    Pads the second-to-last dimension of `x` at the end with
    `len_seq % kernel_size` zero rows.  Works for any rank >= 2; leading dims
    are folded into one batch axis for the kernel.
    """
    assert isinstance(len_seq, int)
    pad = len_seq % kernel_size
    if pad == 0:
        # F.pad with zero padding is value-identical to the input.
        return x

    assert x.ndim >= 2, "zero_padding expects at least a 2-D input"
    lead = x.shape[:-2]
    S, D = x.shape[-2], x.shape[-1]
    B = int(np.prod(lead)) if lead else 1
    S_out = S + pad
    itemsize = x.dtype.itemsize
    pad_cfg = [(0, 0)] * (x.ndim - 2) + [(0, pad), (0, 0)]

    in_w = S * D          # flattened (lane-dense) input row width
    out_w = S_out * D     # flattened output row width

    total_bytes = B * (in_w + out_w) * itemsize
    if not force_pallas and total_bytes < (1 << 20):
        # Tiny tensors: kernel-launch/grid overhead dominates; let XLA fuse.
        return jnp.pad(x, pad_cfg)

    # --- Batch tiling ---------------------------------------------------
    # Real per-row VMEM footprint: double-buffered input + output blocks.
    per_row_bytes = 2 * (in_w + out_w) * itemsize
    budget_bytes = 40 * 1024 * 1024          # fits v7x's 64 MiB VMEM w/ headroom
    rows_fit = budget_bytes // max(1, per_row_bytes)

    if B <= 8:
        # Too small to split under the (8, 128) sublane rule -> one full block.
        if rows_fit < B:
            # TODO(synk): tile the flattened feature axis for extremely long rows.
            return jnp.pad(x, pad_cfg)
        bt = B
    else:
        # >= 4 grid steps when possible (pipelining; >= 2 also lets v7x's two
        # TensorCores share the "parallel" batch axis), rounded to a multiple
        # of 8 to keep the second-to-last block dim sublane-aligned.
        step_cap = max(8, (pl.cdiv(B, 4) // 8) * 8)
        vmem_cap = (rows_fit // 8) * 8
        if vmem_cap < 8:
            # Even 8 double-buffered rows would blow the VMEM budget.
            # TODO(synk): tile the flattened feature axis for extremely long rows.
            return jnp.pad(x, pad_cfg)
        bt = min(step_cap, vmem_cap, B)

    grid = (pl.cdiv(B, bt),)   # ragged last block is masked by Pallas

    x2 = x.reshape(B, in_w)
    kernel = functools.partial(_zero_padding_kernel, in_width=in_w)

    out = pl.pallas_call(
        kernel,
        out_shape=jax.ShapeDtypeStruct((B, out_w), x.dtype),
        grid_spec=pltpu.PrefetchScalarGridSpec(
            num_scalar_prefetch=0,
            grid=grid,
            in_specs=[pl.BlockSpec((bt, in_w), lambda i: (i, 0))],
            out_specs=pl.BlockSpec((bt, out_w), lambda i: (i, 0)),
        ),
        compiler_params=pltpu.CompilerParams(
            dimension_semantics=("parallel",),
            vmem_limit_bytes=48 * 1024 * 1024,
        ),
        cost_estimate=pl.CostEstimate(
            flops=0,
            transcendentals=0,
            bytes_accessed=B * (in_w + out_w) * itemsize,
        ),
    )(x2)

    return out.reshape(*lead, S_out, D) if lead else out.reshape(S_out, D)


def zero_padding_reference(x, *, len_seq, kernel_size):
    """Pure-JAX reference identical to torch F.pad(x, (0, 0, 0, pad))."""
    pad = len_seq % kernel_size
    cfg = [(0, 0)] * (x.ndim - 2) + [(0, pad), (0, 0)]
    return jnp.pad(x, cfg)


if __name__ == "__main__":
    key = jax.random.PRNGKey(0)

    # Small shapes consistent with the module: (batch, seq, d_model).
    B, S, D = 2, 8, 32
    KERNEL_SIZE = 3            # padding = 8 % 3 = 2  -> output seq = 10

    x = jax.random.normal(key, (B, S, D), jnp.float32)
    out = jax.block_until_ready(
        zero_padding(x, len_seq=S, kernel_size=KERNEL_SIZE, force_pallas=True))
    ref = jax.block_until_ready(
        zero_padding_reference(x, len_seq=S, kernel_size=KERNEL_SIZE))
    assert out.shape == (B, S + S % KERNEL_SIZE, D), out.shape
    np.testing.assert_array_equal(np.asarray(out), np.asarray(ref))

    # Multi-step grid (bt=8 -> grid=(2,)) exercising the "parallel" batch axis.
    xb = jax.random.normal(key, (16, S, D), jnp.float32)
    outb = jax.block_until_ready(
        zero_padding(xb, len_seq=S, kernel_size=KERNEL_SIZE, force_pallas=True))
    refb = zero_padding_reference(xb, len_seq=S, kernel_size=KERNEL_SIZE)
    np.testing.assert_array_equal(np.asarray(outb), np.asarray(refb))

    # Ragged last block: B=10 -> bt=8, grid=(2,), second block masked.
    xr = jax.random.normal(key, (10, S, D), jnp.float32)
    outr = jax.block_until_ready(
        zero_padding(xr, len_seq=S, kernel_size=KERNEL_SIZE, force_pallas=True))
    refr = zero_padding_reference(xr, len_seq=S, kernel_size=KERNEL_SIZE)
    np.testing.assert_array_equal(np.asarray(outr), np.asarray(refr))

    # pad == 0 path returns the input unchanged.
    out0 = zero_padding(x, len_seq=S, kernel_size=4)
    np.testing.assert_array_equal(np.asarray(out0), np.asarray(x))

    # Small-input fallback (jnp.pad) matches the Pallas path.
    outs = jax.block_until_ready(
        zero_padding(x, len_seq=S, kernel_size=KERNEL_SIZE))
    np.testing.assert_array_equal(np.asarray(outs), np.asarray(ref))

    print("KERNEL_OK")
</pallas_src>

<mosaic_0001>
module attributes {stable_mosaic.version = 11 : i64} {
  func.func @_zero_padding_kernel(%arg0: i32, %arg1: memref<2x256xf32, #tpu.memory_space<vmem>>, %arg2: memref<2x320xf32, #tpu.memory_space<vmem>>) attributes {dimension_semantics = [#tpu.dimension_semantics<parallel>], iteration_bounds = array<i64: 1>, scalar_prefetch = 0 : i64, scratch_operands = 0 : i64, tpu.core_type = #tpu.core_type<tc>, window_params = [{transform_indices = @transform_0, window_bounds = array<i64: 2, 256>}, {transform_indices = @transform_1, window_bounds = array<i64: 2, 320>}]} {
    %c0 = arith.constant 0 : index
    %c0_0 = arith.constant 0 : index
    %0 = vector.load %arg1[%c0, %c0_0] : memref<2x256xf32, #tpu.memory_space<vmem>>, vector<2x256xf32>
    %c0_1 = arith.constant 0 : index
    %c0_2 = arith.constant 0 : index
    %1 = vector.load %arg2[%c0_1, %c0_2] : memref<2x320xf32, #tpu.memory_space<vmem>>, vector<2x256xf32>
    tpu.vector_store %arg2[%c0_1, %c0_2], %0 {strides = array<i32>} : memref<2x320xf32, #tpu.memory_space<vmem>>, vector<2x256xf32>,
    %cst = arith.constant 0.000000e+00 : f32
    %2 = vector.broadcast %cst : f32 to vector<2x64xf32>
    %c0_3 = arith.constant 0 : index
    %c256 = arith.constant 256 : index
    %3 = vector.load %arg2[%c0_3, %c256] : memref<2x320xf32, #tpu.memory_space<vmem>>, vector<2x64xf32>
    tpu.vector_store %arg2[%c0_3, %c256], %2 {strides = array<i32>} : memref<2x320xf32, #tpu.memory_space<vmem>>, vector<2x64xf32>,
    return
  }
  func.func @transform_0(%arg0: i32) -> (i32, i32) {
    %c0_i32 = arith.constant 0 : i32
    %c0_i32_0 = arith.constant 0 : i32
    return %arg0, %c0_i32 : i32, i32
  }
  func.func @transform_1(%arg0: i32) -> (i32, i32) {
    %c0_i32 = arith.constant 0 : i32
    %c0_i32_0 = arith.constant 0 : i32
    return %arg0, %c0_i32 : i32, i32
  }
}

</mosaic_0001>

<bundles_post_ra>
// kernel: tpu_custom_call.1
= control target key start
LH: loop header
LB: loop body
LE: loop exit
PB: predicated region body
PF: predicated region fallthrough
CT: control target
= control target key end

     0   :  { %6 = vsyncpa [#allocation3], 0  ;;  %s128_s0 = inlined_call_operand.hbm [shape: f32[2,256], index: 0, kind: input, shape index: {}]   ;;  %s129_s1 = inlined_call_operand.hbm [shape: f32[2,320], index: 1, kind: output, shape index: {}]  }
   0x1   :  { %7 = vsyncpa [#allocation4], 0  ;;  %s91_s6 = smov [#allocation2]   ;;  %s43_s10 = scalar_lea.hbm %s128_s0, 64 }
   0x2   :  { %s14_s7 = sshll.u32 %s91_s6, 4  ;;  %p44_p0 = scmp.ne.s32.totalorder %s128_s0, %s43_s10  ;;  %s15_s7 = int_to_ptr.vmem [resolvable:$true] %s14_s7 }
   0x3   :  { %p47_p1 = scmp.lt.u32.totalorder %s43_s10, %s128_s0 }
   0x5   :  { %p49_p2 = pnand %p47_p1, %p44_p0 }
   0x7   :  { %52 = shalt.err (!%p49_p2)
}
   0x8   :  { %s53_s15 = scalar_lea.vmem %s15_s7, 64  ;;  %p58_p4 = scmp.lt.s32.totalorder %s15_s7, %s15_s7 }
   0x9   :  { %p54_p3 = scmp.ne.s32.totalorder %s15_s7, %s53_s15  ;;  %p59_p5 = scmp.lt.s32.totalorder %s53_s15, %s53_s15 }
   0xb   :  { %p60_p6 = por %p59_p5, %p58_p4 }
   0xd   :  { %p61_p7 = pnand %p60_p6, %p54_p3 }
   0xf   :  { %64 = shalt.err (!%p61_p7)
}
  0x10   :  { %17 = dma.hbm_to_vmem [thread:$0]  %s128_s0, 64, %s15_s7, [#allocation3]  }
  0x11   :  { %87 = dma.done.wait [#allocation3], 64  }
  0x12   :  { %88 = vsyncadd [#allocation3], 4294967232  ;;  %vm23_vm0 = vcmask 517120   ;;  %v92_v0 = vmov 0.0   ;;  %s93_s18 = smov [#allocation5]  }
  0x13   :  { %24 = vst.msk [vmem:[#allocation5 + $0x4] sm:$0x3] %vm23_vm0, %v92_v0  ;;  %s31_s19 = sshll.u32 %s93_s18, 4  ;;  %v21_v1 = vld [vmem:[#allocation2] sm:$0xf]  ;;  %s32_s19 = int_to_ptr.vmem [resolvable:$true] %s31_s19 }
  0x14   :  { %22 = vst [vmem:[#allocation5] sm:$0xf] %v21_v1  ;;  %s65_s20 = scalar_lea.vmem %s32_s19, 96  ;;  %p70_p9 = scmp.lt.s32.totalorder %s32_s19, %s32_s19 }
  0x15   :  { %p66_p8 = scmp.ne.s32.totalorder %s32_s19, %s65_s20  ;;  %p71_p10 = scmp.lt.s32.totalorder %s65_s20, %s65_s20 }
  0x17   :  { %p72_p11 = por %p71_p10, %p70_p9 }
  0x19   :  { %p73_p12 = pnand %p72_p11, %p66_p8 }
  0x1b   :  { %76 = shalt.err (!%p73_p12)
}
  0x1c   :  { %s77_s0 = scalar_lea.hbm %s129_s1, 96 }
  0x1d   :  { %p78_p13 = scmp.ne.s32.totalorder %s129_s1, %s77_s0  ;;  %p81_p0 = scmp.lt.u32.totalorder %s77_s0, %s129_s1 }
  0x1f   :  { %p83_p1 = pnand %p81_p0, %p78_p13 }
  0x21   :  { %86 = shalt.err (!%p83_p1)
}
  0x22   :  { %34 = dma.vmem_to_hbm [thread:$0]  %s32_s19, 96, %s129_s1, [#allocation4]  }
  0x23   :  { %89 = dma.done.wait [#allocation4], 96  }
  0x24   :  { %90 = vsyncadd [#allocation4], 4294967200 }
  0x25   :  { %38 = vsyncpa [#allocation3], 1 }
  0x26   :  { %39 = vsyncpa [#allocation4], 1 }

</bundles_post_ra>
